<compile_context>
chip_gen: v6e
topology: v6e:2x2x1
jax: 0.10.0
libtpu: 0.0.40
codegen_flags: <defaults>
</compile_context>

<pallas_src>
import functools

import jax
import jax.numpy as jnp
from jax.experimental import pallas as pl
from jax.experimental.pallas import tpu as pltpu


def _pick_tile(m, target=512):
    """Largest tile <= target that divides m and is a multiple of 8."""
    if m <= target:
        return m
    t = target
    while t >= 8:
        if m % t == 0:
            return t
        t -= 8
    return m


# ------------- Pallas kernel: fused matmul + bias + ReLU (backbone proj) -------------
def _matmul_bias_kernel(x_ref, w_ref, b_ref, o_ref, *, apply_relu):
    # x_ref: (1, TM, K) bf16   w_ref: (K, C) bf16   b_ref: (1, C) f32   o_ref: (1, TM, C)
    y = jnp.dot(x_ref[0], w_ref[...], preferred_element_type=jnp.float32)
    y = y + b_ref[...]
    if apply_relu:
        y = jnp.maximum(y, 0.0)
    o_ref[0] = y.astype(o_ref.dtype)


def matmul_bias(x, w, bias, *, apply_relu, out_dtype=jnp.bfloat16, tile_m=512):
    """x: (N, M, K); w: (K, C); bias: (C,)  ->  (N, M, C)."""
    N, M, K = x.shape
    C = w.shape[1]
    TM = _pick_tile(M, tile_m)
    b2 = bias.reshape(1, C).astype(jnp.float32)
    return pl.pallas_call(
        functools.partial(_matmul_bias_kernel, apply_relu=apply_relu),
        out_shape=jax.ShapeDtypeStruct((N, M, C), out_dtype),
        grid=(N, M // TM),
        in_specs=[
            pl.BlockSpec((1, TM, K), lambda n, m: (n, m, 0)),
            pl.BlockSpec((K, C), lambda n, m: (0, 0)),
            pl.BlockSpec((1, C), lambda n, m: (0, 0)),
        ],
        out_specs=pl.BlockSpec((1, TM, C), lambda n, m: (n, m, 0)),
        compiler_params=pltpu.CompilerParams(
            dimension_semantics=("parallel", "parallel")),
    )(x.astype(jnp.bfloat16), w.astype(jnp.bfloat16), b2)


# ------------- Pallas kernels: sub-pixel deconv + folded BN + ReLU (+ fused head) -------------
# tap order in cols:     [a, b, c, d] = [x(j,i), x(j,i+1), x(j+1,i), x(j+1,i+1)]
# weight block order k:  0: ee<-a | 1: eo<-a  2: eo<-b | 3: oe<-a  4: oe<-c
#                        5: oo<-a  6: oo<-b  7: oo<-c  8: oo<-d
def _deconv_parity_blocks(cols_ref, w_ref, b_ref):
    a, b, c, d = cols_ref[0, 0], cols_ref[0, 1], cols_ref[0, 2], cols_ref[0, 3]
    mm = lambda t, k: jnp.dot(t, w_ref[k], preferred_element_type=jnp.float32)
    ee = mm(a, 0)
    eo = mm(a, 1) + mm(b, 2)
    oe = mm(a, 3) + mm(c, 4)
    oo = mm(a, 5) + mm(b, 6) + mm(c, 7) + mm(d, 8)
    bias = b_ref[...]                                   # (1, Cout) f32
    return [jnp.maximum(p + bias, 0.0) for p in (ee, eo, oe, oo)]


def _deconv_bn_relu_kernel(cols_ref, w_ref, b_ref, o_ref):
    blocks = _deconv_parity_blocks(cols_ref, w_ref, b_ref)
    o_ref[0] = jnp.concatenate(blocks, axis=-1).astype(o_ref.dtype)


def _deconv_bn_relu_head_kernel(cols_ref, w_ref, b_ref, hw_ref, hb_ref, o_ref):
    blocks = _deconv_parity_blocks(cols_ref, w_ref, b_ref)
    outs = [jnp.dot(p, hw_ref[...], preferred_element_type=jnp.float32) + hb_ref[...]
            for p in blocks]
    o_ref[0] = jnp.concatenate(outs, axis=-1).astype(o_ref.dtype)


def deconv_bn_relu(x_nhwc, w9, bias, *, head_w=None, head_b=None, tile_m=512):
    """Fused ConvTranspose2d(3, s2, p1, op1) + folded-BN + ReLU (+ optional 1x1 head).

    x_nhwc: (N, H, W, Cin); w9: (9, Cin, Cout) sub-pixel blocks (BN scale folded);
    bias: (Cout,).  Returns (N, 2H, 2W, Cout)   [or (N, 2H, 2W, nc2) with head].
    """
    N, H, W, Cin = x_nhwc.shape
    Cout = w9.shape[2]
    M = H * W
    TM = _pick_tile(M, tile_m)

    # 4-tap sub-pixel neighbourhood (right/bottom zero-padded): (N, 4, M, Cin) bf16.
    xp = jnp.pad(x_nhwc, ((0, 0), (0, 1), (0, 1), (0, 0)))
    taps = jnp.stack(
        [xp[:, :H, :W, :], xp[:, :H, 1:, :], xp[:, 1:, :W, :], xp[:, 1:, 1:, :]],
        axis=1,
    ).reshape(N, 4, M, Cin).astype(jnp.bfloat16)

    b2 = bias.reshape(1, Cout).astype(jnp.float32)

    if head_w is None:
        kernel = _deconv_bn_relu_kernel
        c_total = 4 * Cout
        out_dtype = jnp.bfloat16
        extra_in, extra_specs = [], []
        flops = 2 * N * M * 9 * Cin * Cout
    else:
        nc2 = head_w.shape[1]
        kernel = _deconv_bn_relu_head_kernel
        c_total = 4 * nc2
        out_dtype = jnp.float32
        extra_in = [head_w.astype(jnp.float32),
                    head_b.reshape(1, nc2).astype(jnp.float32)]
        extra_specs = [pl.BlockSpec((Cout, nc2), lambda n, m: (0, 0)),
                       pl.BlockSpec((1, nc2), lambda n, m: (0, 0))]
        flops = 2 * N * M * (9 * Cin * Cout + 4 * Cout * nc2)

    bytes_accessed = (taps.size * 2 + 9 * Cin * Cout * 2
                      + N * M * c_total * (2 if head_w is None else 4))

    out = pl.pallas_call(
        kernel,
        out_shape=jax.ShapeDtypeStruct((N, M, c_total), out_dtype),
        grid=(N, M // TM),
        in_specs=[
            pl.BlockSpec((1, 4, TM, Cin), lambda n, m: (n, 0, m, 0)),
            pl.BlockSpec((9, Cin, Cout), lambda n, m: (0, 0, 0)),
            pl.BlockSpec((1, Cout), lambda n, m: (0, 0)),
        ] + extra_specs,
        out_specs=pl.BlockSpec((1, TM, c_total), lambda n, m: (n, m, 0)),
        compiler_params=pltpu.CompilerParams(
            dimension_semantics=("parallel", "parallel")),
        cost_estimate=pl.CostEstimate(flops=flops, transcendentals=0,
                                      bytes_accessed=bytes_accessed),
    )(taps, w9.astype(jnp.bfloat16), b2, *extra_in)

    # depth-to-space: channel blocks ordered [ee, eo, oe, oo] -> (N, 2H, 2W, C).
    C = c_total // 4
    out = out.reshape(N, H, W, 2, 2, C).transpose(0, 1, 3, 2, 4, 5)
    return out.reshape(N, 2 * H, 2 * W, C)


# ----------------------------- weight construction -----------------------------
def _deconv_weight_blocks(w_t, bn_scale):
    """PyTorch ConvTranspose2d weight (Cin, Cout, 3, 3) -> (9, Cin, Cout) sub-pixel
    blocks (spatial flip + parity decomposition), with BN scale folded into columns."""
    g = lambda kh, kw: w_t[:, :, kh, kw]
    blocks = [
        g(1, 1),                              # ee <- a
        g(1, 2), g(1, 0),                     # eo <- a, b
        g(2, 1), g(0, 1),                     # oe <- a, c
        g(2, 2), g(2, 0), g(0, 2), g(0, 0),   # oo <- a, b, c, d
    ]
    w9 = jnp.stack(blocks, axis=0)            # (9, Cin, Cout)
    return w9 * bn_scale[None, None, :]


# ------------------------------ the model ------------------------------
class SegmentationNetworkHFF:
    def __init__(self, num_classes, key, ch_scale=16):
        self.num_classes = num_classes
        # original: [2048, 1024, 512, 256, 128]; scaled /16 for a small test.
        chs = [2048 // ch_scale, 1024 // ch_scale, 512 // ch_scale,
               256 // ch_scale, 128 // ch_scale]
        self.chs = chs
        feat_c = chs[0] // 4   # four backbone features concatenated -> chs[0]

        keys = iter(jax.random.split(key, 40))
        init = lambda shape, s=0.05: s * jax.random.normal(next(keys), shape, jnp.float32)

        # TODO(synk): the pretrained torchvision fcn_resnet50 backbone (and its
        # 'out2'/'out3'/'out4' keys, which torchvision does not even produce) cannot
        # be reproduced in-script; replaced by a deterministic stride-8 pooled
        # 1x1-projection surrogate producing the four features the forward concatenates.
        # The four projections are fused into a single (3, chs[0]) matmul: weight
        # concatenation along the output axis == torch.cat of the features on dim=1.
        bw = [init((3, feat_c)) for _ in range(4)]
        bb = [init((feat_c,)) for _ in range(4)]
        self.backbone_w = jnp.concatenate(bw, axis=1)          # (3, chs[0])
        self.backbone_b = jnp.concatenate(bb, axis=0)          # (chs[0],)

        # classifier: 4 x [ConvTranspose2d(3x3, s2, p1, op1, bias=False) + BN + ReLU]
        # BatchNorm folded: scale into the weight columns, bias kept separate.
        self.deconv_w9, self.bn_bias = [], []
        eps = 1e-5
        for cin, cout in zip(chs[:-1], chs[1:]):
            w_t = init((cin, cout, 3, 3))
            gamma = 1.0 + init((cout,))
            beta = init((cout,))
            mean = init((cout,))
            var = 1.0 + jnp.abs(init((cout,)))
            scale = gamma / jnp.sqrt(var + eps)
            self.deconv_w9.append(_deconv_weight_blocks(w_t, scale))
            self.bn_bias.append(beta - mean * scale)

        # TODO(synk): original nn.Conv2d(256, num_classes*2, 1) mismatches the
        # preceding 128-channel output (would error in PyTorch); use the actual
        # preceding channel count so the forward is runnable.
        self.head_w = init((chs[-1], num_classes * 2))
        self.head_b = init((num_classes * 2,))

    def __call__(self, x_nchw):
        N, C, H, W = x_nchw.shape
        x = jnp.transpose(x_nchw, (0, 2, 3, 1)).astype(jnp.float32)      # NHWC

        # ---- surrogate backbone: output stride 8 (matches dilated FCN-ResNet50) ----
        Hf, Wf = H // 8, W // 8
        pooled = x.reshape(N, Hf, 8, Wf, 8, C).mean(axis=(2, 4))          # (N,Hf,Wf,3)
        pooled_flat = pooled.reshape(N, Hf * Wf, C)
        # single fused projection == torch.cat((out, out2, out3, out4), dim=1)
        y = matmul_bias(pooled_flat, self.backbone_w, self.backbone_b, apply_relu=True)
        y = y.reshape(N, Hf, Wf, self.chs[0])

        # ---- classifier: first 3 x (deconv + folded BN + ReLU) ----
        for w9, b in zip(self.deconv_w9[:-1], self.bn_bias[:-1]):
            y = deconv_bn_relu(y, w9, b)

        # Dropout2d: eval-mode identity.
        # TODO(synk): training-mode channel dropout (RNG) not modeled.

        # ---- last deconv + BN + ReLU with the 1x1 head conv fused in-kernel ----
        out = deconv_bn_relu(y, self.deconv_w9[-1], self.bn_bias[-1],
                             head_w=self.head_w, head_b=self.head_b)
        return jnp.transpose(out, (0, 3, 1, 2))                          # back to NCHW


if __name__ == "__main__":
    key = jax.random.PRNGKey(0)
    kx, kp = jax.random.split(key)
    x = jax.random.normal(kx, (2, 3, 32, 32), jnp.float32)               # NCHW input
    model = SegmentationNetworkHFF(num_classes=3, key=kp, ch_scale=16)
    out = jax.block_until_ready(model(x))
    assert out.shape == (2, 6, 64, 64), out.shape     # (N, num_classes*2, 2H, 2W)
    assert bool(jnp.all(jnp.isfinite(out)))
    print("KERNEL_OK")
</pallas_src>

<mosaic_0001>
module attributes {stable_mosaic.version = 11 : i64} {
  func.func @_matmul_bias_kernel(%arg0: i32, %arg1: i32, %arg2: memref<1x16x3xbf16, #tpu.memory_space<vmem>>, %arg3: memref<3x128xbf16, #tpu.memory_space<vmem>>, %arg4: memref<1x128xf32, #tpu.memory_space<vmem>>, %arg5: memref<1x16x128xbf16, #tpu.memory_space<vmem>>) attributes {dimension_semantics = [#tpu.dimension_semantics<parallel>, #tpu.dimension_semantics<parallel>], iteration_bounds = array<i64: 2, 1>, scalar_prefetch = 0 : i64, scratch_operands = 0 : i64, tpu.core_type = #tpu.core_type<tc>, window_params = [{transform_indices = @transform_0, window_bounds = array<i64: 1, 16, 3>}, {pipeline_mode = #tpu.pipeline_mode<synchronous>, transform_indices = @transform_1, window_bounds = array<i64: 3, 128>}, {pipeline_mode = #tpu.pipeline_mode<synchronous>, transform_indices = @transform_2, window_bounds = array<i64: 1, 128>}, {transform_indices = @transform_3, window_bounds = array<i64: 1, 16, 128>}]} {
    %c0 = arith.constant 0 : index
    %c0_0 = arith.constant 0 : index
    %c0_1 = arith.constant 0 : index
    %0 = vector.load %arg2[%c0, %c0_0, %c0_1] : memref<1x16x3xbf16, #tpu.memory_space<vmem>>, vector<1x16x3xbf16>
    %1 = vector.shape_cast %0 : vector<1x16x3xbf16> to vector<16x3xbf16>
    %c0_2 = arith.constant 0 : index
    %c0_3 = arith.constant 0 : index
    %2 = vector.load %arg3[%c0_2, %c0_3] : memref<3x128xbf16, #tpu.memory_space<vmem>>, vector<3x128xbf16>
    %cst = arith.constant dense<0.000000e+00> : vector<16x128xf32>
    %3 = tpu.matmul %1, %2, %cst {dimension_numbers = #tpu.dot_dimension_numbers<[1], [0], [0], [1], [0, 0, 1, 1], [], []>} : vector<16x3xbf16>, vector<3x128xbf16>, vector<16x128xf32> -> vector<16x128xf32>
    %c0_4 = arith.constant 0 : index
    %c0_5 = arith.constant 0 : index
    %4 = vector.load %arg4[%c0_4, %c0_5] : memref<1x128xf32, #tpu.memory_space<vmem>>, vector<1x128xf32>
    %5 = vector.broadcast %4 : vector<1x128xf32> to vector<16x128xf32>
    %6 = arith.addf %3, %5 : vector<16x128xf32>
    %cst_6 = arith.constant 0.000000e+00 : f32
    %7 = vector.broadcast %cst_6 : f32 to vector<16x128xf32>
    %8 = arith.maximumf %6, %7 : vector<16x128xf32>
    %9 = arith.truncf %8 : vector<16x128xf32> to vector<16x128xbf16>
    %c0_7 = arith.constant 0 : index
    %c0_8 = arith.constant 0 : index
    %c0_9 = arith.constant 0 : index
    %10 = vector.load %arg5[%c0_7, %c0_8, %c0_9] : memref<1x16x128xbf16, #tpu.memory_space<vmem>>, vector<1x16x128xbf16>
    %11 = vector.shape_cast %10 : vector<1x16x128xbf16> to vector<16x128xbf16>
    %12 = vector.shape_cast %9 : vector<16x128xbf16> to vector<1x16x128xbf16>
    tpu.vector_store %arg5[%c0_7, %c0_8, %c0_9], %12 {strides = array<i32>} : memref<1x16x128xbf16, #tpu.memory_space<vmem>>, vector<1x16x128xbf16>,
    return
  }
  func.func @transform_0(%arg0: i32, %arg1: i32) -> (i32, i32, i32) {
    %c0_i32 = arith.constant 0 : i32
    %c0_i32_0 = arith.constant 0 : i32
    return %arg0, %arg1, %c0_i32 : i32, i32, i32
  }
  func.func @transform_1(%arg0: i32, %arg1: i32) -> (i32, i32) {
    %c0_i32 = arith.constant 0 : i32
    %c0_i32_0 = arith.constant 0 : i32
    %c0_i32_1 = arith.constant 0 : i32
    return %c0_i32, %c0_i32_0 : i32, i32
  }
  func.func @transform_2(%arg0: i32, %arg1: i32) -> (i32, i32) {
    %c0_i32 = arith.constant 0 : i32
    %c0_i32_0 = arith.constant 0 : i32
    %c0_i32_1 = arith.constant 0 : i32
    return %c0_i32, %c0_i32_0 : i32, i32
  }
  func.func @transform_3(%arg0: i32, %arg1: i32) -> (i32, i32, i32) {
    %c0_i32 = arith.constant 0 : i32
    %c0_i32_0 = arith.constant 0 : i32
    return %arg0, %arg1, %c0_i32 : i32, i32, i32
  }
}

</mosaic_0001>

<bundles_post_ra>
// kernel: tpu_custom_call.1
= control target key start
LH: loop header
LB: loop body
LE: loop exit
PB: predicated region body
PF: predicated region fallthrough
CT: control target
= control target key end

     0   :  { %8 = vsyncpa [#allocation3], 0  ;;  %s695_s0 = inlined_call_operand.vmem [shape: bf16[2,16,3], index: 0, kind: input, shape index: {}]   ;;  %s696_s1 = inlined_call_operand.vmem [shape: bf16[3,128], index: 1, kind: input, shape index: {}]   ;;  %s697_s2 = inlined_call_operand.vmem [shape: f32[1,128], index: 2, kind: input, shape index: {}]   ;;  %s698_s3 = inlined_call_operand.hbm [shape: bf16[2,16,128], index: 3, kind: output, shape index: {}]  }
   0x1   :  { %10 = vsyncpa [#allocation3 + $0x1], 0  ;;  %s575_s12 = smov 0   ;;  %s577_s13 = smov 0  }
   0x2   :  { %s579_s14 = smov 0   ;;  %s581_s15 = smov 0  }
   0x3   :  { %s583_s16 = smov 0   ;;  %s585_s17 = smov 0  }
   0x4 LB: > { %s375_s18 = sadd.s32 4294967295, %s547_s17   ;;  %s376_s19 = sadd.s32 4294967294, %s547_s17   ;;  %s547_s17 = sphi %s585_s17, %s16_s17   ;;  %s543_s16 = sphi %s583_s16, %s705_s16   ;;  %s539_s15 = sphi %s581_s15, %s704_s15   ;;  %s535_s14 = sphi %s579_s14, %s703_s14   ;;  %s531_s13 = sphi %s577_s13, %s702_s13   ;;  %s527_s12 = sphi %s575_s12, %s701_s12  }
   0x5   : > { %s28_s20 = sadd.s32 1, %s543_s16  ;;  %s107_s21 = sadd.s32 1, %s535_s14 }
   0x6   : > { %p30_p0 = scmp.ge.s32.totalorder %s28_s20, 2  ;;  %p117_p1 = scmp.ne.s32.totalorder %s535_s14, %s531_s13 }
   0x7   : > { %p118_p2 = scmp.eq.s32.totalorder %s375_s18, 1  ;;  %p123_p3 = scmp.ne.s32.totalorder %s531_s13, %s527_s12 }
   0x8   : > { %s707_s20 = smov (%p30_p0, %s28_s20), 0  ;;  %p124_p5 = scmp.eq.s32.totalorder %s376_s19, 1 }
   0x9   : > { %p615_p4 = por %p118_p2, %p117_p1  ;;  %s102_s23 = ssub.s32 %s543_s16, %s707_s20 }
   0xa   : > { %p379_p6 = scmp.ge.s32.totalorder %s547_s17, 1  ;;  %p105_p7 = scmp.eq.s32.totalorder %s102_s23, 0 }
   0xb   : > { %p622_p8 = por %p124_p5, %p123_p3  ;;  %p161_p9 = scmp.lt.s32.totalorder %s547_s17, 3 }
   0xc   : > { %s628_s25 = scalar_select %p105_p7, %s535_s14, %s107_s21  }
   0xd   : > { %p162_p10 = pnand %p379_p6, %p161_p9 }
   0xe   : > { %p190_p11 = scmp.lt.s32.totalorder (!%p162_p10), %s539_s15, 1  ;;  %s186_s6 = sand.u32 (!%p162_p10), 1, %s531_s13  }
   0xf   : > { %165 = sbr.rel (%p162_p10) target bundleno = 245 (0xf5), region = 32  ;;  %s380_s7 = sshll.u32 (!%p162_p10), %s186_s6, 3 }
  0x10   : > { %s188_s10 = scalar_lea.vmem (!%p162_p10), [#allocation2], %s380_s7  ;;  %s396_s18 = sshll.u32 (!%p162_p10), %s539_s15, 7 }
  0x11   : > { %s296_s11 = sshll.u32 (!%p162_p10), %s188_s10, 4  ;;  %s648_s23 = scalar_lea.hbm (!%p162_p10), %s698_s3, %s396_s18  ;;  %s643_s11 = int_to_ptr.vmem [resolvable:$true] %s296_s11 }
  0x12   : > { %s650_s26 = scalar_lea.sflag (!%p162_p10), [#allocation3], %s186_s6  ;;  %s471_s27 = scalar_lea.vmem (!%p162_p10), %s643_s11, 128 }
  0x13   : > { %p472_p12 = scmp.ne.s32.totalorder (!%p162_p10), %s643_s11, %s471_s27 }
  0x14   : > { %v203_v0 = vld [vmem:[%s696_s1] sm:$0x3]  ;;  %vm220_vm0 = vcmask 1040384   ;;  %vm221_vm1 = vcmask 1041408   ;;  %v549_v1 = vmov 0.0   ;;  %v550_v2 = vmov 65535  }
  0x15   : > { %404 = vmatprep.subr.bf16.mxu0 %v549_v1  ;;  %v222_v3 = vsel %vm220_vm0, 4294967295, %v550_v2  ;;  %vm551_vm2 = vmmov 0   ;;  %s191_s28 = scalar_select %p190_p11, %s539_s15, 1  ;;  %vm216_vm3 = vcmask 23552   ;;  %v383_v7 = vld [vmem:[%s697_s2] ss:$0 sm:$0xff] }
  0x16   : > { %v223_v4 = vsel %vm221_vm1, %v222_v3, 0  ;;  %406 = vmatprep.mubr.msk.bf16.mxu0 %vm551_vm2, %v549_v1  ;;  %p473_p13 = pnand %p472_p12, %p615_p4  ;;  %s552_s15 = smov [#allocation2]  }
  0x17   : > { %v225_v5 = vand.u32 %v223_v4, %v203_v0  ;;  %s393_s29 = sshll.u32 %s191_s28, 3  ;;  %s475_s28 = sshll.u32 %s552_s15, 4  ;;  %s476_s28 = int_to_ptr.vmem [resolvable:$false] %s475_s28 }
  0x18   : > { %s197_s5 = scalar_lea.vmem %s695_s0, %s393_s29  ;;  %p474_p0 = pneg %p473_p13 }
  0x19   : > { %405 = vmatpush3.bf16.msra.mxu0 %v225_v5  ;;  %v470_v6 = vld [vmem:[%s197_s5] sm:$0xff]   ;;  %s477_s29 = scalar_lea.vmem %s476_s28, 256  ;;  %p478_p1 = scmp.lt.s32.totalorder %s643_s11, %s476_s28 }
  0x1a   : > { %p479_p2 = scmp.lt.s32.totalorder %s477_s29, %s471_s27 }
  0x1c   : > { %407 = vmatmul.mubr.msk.bf16.vlgmr.msra.gmra.mxu0 %vm216_vm3, %v470_v6  ;;  %p480_p3 = por %p479_p2, %p478_p1 }
  0x1e   : > { %p481_p5 = pnand %p480_p3, %p474_p0 }
  0xdc   : > { %v261_v8 = vpop.f32.mrf.mxu0 }
  0xdd   : > { %v262_v10 = vadd.f32 %v383_v7, %v261_v8 }
  0xde   : > { %v408_v9 = vpop.f32.mrf.mxu0 }
  0xdf   : > { %v268_v14 = vmax.f32 %v262_v10, 0.0 }
  0xe0   : > { %v264_v11 = vpop.f32.mrf.mxu0 }
  0xe1   : > { %v265_v12 = vadd.f32 %v383_v7, %v264_v11 }
  0xe2   : > { %v409_v13 = vpop.f32.mrf.mxu0 }
  0xe3   : > { %v269_v15 = vmax.f32 %v265_v12, 0.0 }
  0xe5   : > { %v400_v16 = vpack.c.bf16 %v269_v15, %v268_v14 }
  0xe7   : > { %401 = vst [vmem:[%s188_s10] sm:$0xff] %v400_v16  }
  0xe8   : > { %484 = shalt.err (!%p481_p5)
}
  0xe9   : > { %s485_s30 = scalar_lea.hbm %s648_s23, 128  ;;  %s489_s6 = scalar_lea.hbm %s698_s3, 256 }
  0xea   : > { %p486_p6 = scmp.ne.s32.totalorder %s648_s23, %s485_s30  ;;  %p490_p10 = scmp.lt.s32.totalorder %s648_s23, %s698_s3 }
  0xeb   : > { %p491_p11 = scmp.lt.s32.totalorder %s489_s6, %s485_s30 }
  0xec   : > { %p487_p7 = pnand %p486_p6, %p615_p4 }
  0xed   : > { %p492_p12 = por %p491_p11, %p490_p10 }
  0xee   : > { %p488_p9 = pneg %p487_p7 }
  0xf0   : > { %p493_p13 = pnand %p492_p12, %p488_p9 }
  0xf2   : > { %496 = shalt.err (!%p493_p13)
}
  0xf3   : > { %s553_s9 = smov 64   ;;  %s554_s10 = smov 4  }
  0xf4   : > { %410 = dma.vmem_to_hbm [thread:$0]  (%p615_p4), %s643_s11, 128, %s648_s23, %s650_s26, %s553_s9, %s553_s9, %s554_s10  }
  0xf5 PF: > { %p416_p0 = scmp.ge.s32.totalorder %s547_s17, 2  ;;  %s311_s18 = sand.u32 1, %s527_s12  }
  0xf6   : > { %s312_s19 = scalar_lea.sflag [#allocation3], %s311_s18 }
  0xf7   : > { %p413_p1 = pnand %p416_p0, %p622_p8 }
  0xf9   : > { %p414_p2 = pneg %p413_p1 }
  0xfb   : > { %522 = dma.done.wait (%p414_p2), %s312_s19, 128  }
  0xfc   : > { %524 = vsyncadd (%p414_p2), %s312_s19, 4294967168  ;;  %s16_s17 = sadd.s32 1, %s547_s17   ;;  %s701_s12 = smov %s531_s13 }
  0xfd   : > { %p13_p3 = scmp.ge.s32.totalorder %s16_s17, 4   ;;  %s702_s13 = smov %s535_s14 }
  0xfe   : > { %s703_s14 = smov %s628_s25  ;;  %s704_s15 = smov %s543_s16 }
  0xff   : > { %s705_s16 = smov %s707_s20  ;;  %15 = sbr.rel (!%p13_p3) target bundleno = 4 (0x4), region = 67 }
 0x104   :  { %317 = vsyncpa [#allocation3], 1 }
 0x105   :  { %319 = vsyncpa [#allocation3 + $0x1], 1 }

</bundles_post_ra>
